<compile_context>
chip_gen: v6e
topology: v6e:2x2x1
jax: 0.10.0
libtpu: 0.0.40
codegen_flags: <defaults>
</compile_context>

<pallas_src>
import jax
import jax.numpy as jnp
from jax.experimental import pallas as pl
from jax.experimental.pallas import tpu as pltpu


def _cdiv(a, b):
    return (a + b - 1) // b


def _round_up(n, m):
    return ((n + m - 1) // m) * m


def _scaled_silu_kernel(x_ref, s_ref, o_ref):
    # x_ref: (block_rows, block_h) tile.  s_ref: (1, block_h) scales row.
    x = x_ref[...]
    act = x * jax.nn.sigmoid(x)                       # SiLU in native dtype
    # Tiny per-channel reciprocal (block_h elems) in f32, then broadcast-mul.
    inv = (1.0 / s_ref[...].astype(jnp.float32)).astype(act.dtype)
    o_ref[...] = (act * inv).astype(o_ref.dtype)


def scaled_activation(x, scales, *, tile_rows=512, tile_h=2048,
                      vmem_limit_bytes=None, donate_input=False):
    """y = silu(x) / scales, scales broadcast along the last axis.

    x:      (..., H)   -- typically (B, S, H)
    scales: (H,)
    Output dtype follows x.dtype (scales may be wider; the reciprocal is
    computed in f32 regardless).
    """
    orig_shape = x.shape
    H = orig_shape[-1]
    rows = 1
    for d in orig_shape[:-1]:
        rows *= d

    itemsize = jnp.dtype(x.dtype).itemsize
    # Sublane granularity: 8 for 32-bit, 16 for 16-bit, 32 for 8-bit dtypes.
    sub = 8 * max(1, 4 // itemsize)

    # Row (sublane) blocking: keep block *bytes* constant across dtypes
    # (~4 MiB at the f32 defaults), clamp to the (padded) row count.
    tile_rows_eff = max(sub, tile_rows * max(1, 4 // itemsize))
    block_rows = min(tile_rows_eff, _round_up(rows, sub))
    block_rows = max(sub, _round_up(block_rows, sub))

    # Lane (H) blocking: full H when it fits in one tile, otherwise a
    # 128-multiple tile with a cdiv grid (last partial block is masked).
    tile_h_eff = max(128, (tile_h // 128) * 128)
    block_h = H if H <= tile_h_eff else tile_h_eff

    # Decode shapes: a single row-block would leave one v7x TC idle; split H.
    if _cdiv(rows, block_rows) == 1 and block_h == H and H % 128 == 0 and H >= 256:
        block_h = _round_up(_cdiv(H, 2), 128)

    # VMEM budget from the actual chip generation (fallback: v7x's 64 MiB).
    try:
        vmem_phys = pltpu.get_tpu_info().vmem_capacity_bytes
    except Exception:  # pragma: no cover - non-TPU / interpret environments
        vmem_phys = 64 * 1024 * 1024
    if vmem_limit_bytes is None:
        vmem_limit_bytes = int(vmem_phys * 0.6)

    scales_itemsize = jnp.dtype(scales.dtype).itemsize

    def _footprint(br, bh):
        # double-buffered input + output tiles + scales row
        return 2 * br * bh * itemsize * 2 + 2 * bh * scales_itemsize

    while _footprint(block_rows, block_h) > vmem_limit_bytes and block_rows > sub:
        block_rows = max(sub, _round_up(block_rows // 2, sub))

    grid = (_cdiv(rows, block_rows), _cdiv(H, block_h))

    x2 = x.reshape(rows, H)
    s2 = scales.reshape(1, H)

    extra = {}
    if donate_input:
        extra["input_output_aliases"] = {0: 0}

    out2 = pl.pallas_call(
        _scaled_silu_kernel,
        out_shape=jax.ShapeDtypeStruct((rows, H), x.dtype),
        grid_spec=pltpu.PrefetchScalarGridSpec(
            num_scalar_prefetch=0,
            grid=grid,
            in_specs=[
                pl.BlockSpec((block_rows, block_h), lambda i, j: (i, j)),
                pl.BlockSpec((1, block_h), lambda i, j: (0, j)),
            ],
            out_specs=pl.BlockSpec((block_rows, block_h), lambda i, j: (i, j)),
        ),
        compiler_params=pltpu.CompilerParams(
            dimension_semantics=("parallel", "parallel"),
            vmem_limit_bytes=int(vmem_limit_bytes),
        ),
        **extra,
    )(x2, s2)

    return out2.reshape(orig_shape)


if __name__ == "__main__":
    key = jax.random.PRNGKey(0)

    def ref_fn(x, s):
        return (x * jax.nn.sigmoid(x)) / s.reshape((1,) * (x.ndim - 1) + (-1,))

    # Primary small-shape check (batch, seq, hidden), as implied by the module.
    B, S, H = 2, 8, 32
    kx, ks = jax.random.split(key)
    x = jax.random.normal(kx, (B, S, H), dtype=jnp.float32)
    scales = jax.random.uniform(ks, (H,), dtype=jnp.float32,
                                minval=0.5, maxval=1.5)
    y = scaled_activation(x, scales)
    jax.block_until_ready(y)
    assert jnp.allclose(y, ref_fn(x, scales), atol=1e-5, rtol=1e-5), \
        "mismatch vs reference (f32, small)"

    # Ragged rows + multi-block H: exercises cdiv grids / masked boundary
    # blocks on both axes (no wrapper-side pad/slice anymore).
    B2, S2, H2 = 3, 7, 384
    kx2, ks2 = jax.random.split(ks)
    xb = jax.random.normal(kx2, (B2, S2, H2), dtype=jnp.float32)
    sb = jax.random.uniform(ks2, (H2,), dtype=jnp.float32,
                            minval=0.5, maxval=1.5)
    yb = scaled_activation(xb, sb, tile_rows=8, tile_h=256)
    jax.block_until_ready(yb)
    assert jnp.allclose(yb, ref_fn(xb, sb), atol=1e-5, rtol=1e-5), \
        "mismatch vs reference (ragged / multi-block)"

    # bf16 path (native-dtype activation, decode-shaped H split).
    kx3, ks3 = jax.random.split(ks2)
    xc = jax.random.normal(kx3, (2, 4, 256), dtype=jnp.bfloat16)
    sc = jax.random.uniform(ks3, (256,), dtype=jnp.float32,
                            minval=0.5, maxval=1.5)
    yc = scaled_activation(xc, sc)
    jax.block_until_ready(yc)
    refc = ref_fn(xc.astype(jnp.float32), sc)
    assert jnp.allclose(yc.astype(jnp.float32), refc, atol=2e-2, rtol=2e-2), \
        "mismatch vs reference (bf16)"

    print("KERNEL_OK")
</pallas_src>

<mosaic_0001>
module attributes {stable_mosaic.version = 11 : i64} {
  func.func @_scaled_silu_kernel(%arg0: i32, %arg1: i32, %arg2: memref<16x32xf32, #tpu.memory_space<vmem>>, %arg3: memref<1x32xf32, #tpu.memory_space<vmem>>, %arg4: memref<16x32xf32, #tpu.memory_space<vmem>>) attributes {dimension_semantics = [#tpu.dimension_semantics<parallel>, #tpu.dimension_semantics<parallel>], iteration_bounds = array<i64: 1, 1>, scalar_prefetch = 0 : i64, scratch_operands = 0 : i64, tpu.core_type = #tpu.core_type<tc>, window_params = [{transform_indices = @transform_0, window_bounds = array<i64: 16, 32>}, {transform_indices = @transform_1, window_bounds = array<i64: 1, 32>}, {transform_indices = @transform_2, window_bounds = array<i64: 16, 32>}]} {
    %c0 = arith.constant 0 : index
    %c0_0 = arith.constant 0 : index
    %0 = vector.load %arg2[%c0, %c0_0] : memref<16x32xf32, #tpu.memory_space<vmem>>, vector<16x32xf32>
    %1 = arith.negf %0 : vector<16x32xf32>
    %2 = math.exp %1 : vector<16x32xf32>
    %cst = arith.constant 1.000000e+00 : f32
    %3 = vector.broadcast %cst : f32 to vector<16x32xf32>
    %4 = arith.addf %3, %2 : vector<16x32xf32>
    %5 = arith.divf %3, %4 : vector<16x32xf32>
    %6 = arith.mulf %0, %5 : vector<16x32xf32>
    %c0_1 = arith.constant 0 : index
    %c0_2 = arith.constant 0 : index
    %7 = vector.load %arg3[%c0_1, %c0_2] : memref<1x32xf32, #tpu.memory_space<vmem>>, vector<1x32xf32>
    %cst_3 = arith.constant 1.000000e+00 : f32
    %8 = vector.broadcast %cst_3 : f32 to vector<1x32xf32>
    %9 = arith.divf %8, %7 : vector<1x32xf32>
    %10 = vector.broadcast %9 : vector<1x32xf32> to vector<16x32xf32>
    %11 = arith.mulf %6, %10 : vector<16x32xf32>
    %c0_4 = arith.constant 0 : index
    %c0_5 = arith.constant 0 : index
    %12 = vector.load %arg4[%c0_4, %c0_5] : memref<16x32xf32, #tpu.memory_space<vmem>>, vector<16x32xf32>
    tpu.vector_store %arg4[%c0_4, %c0_5], %11 {strides = array<i32>} : memref<16x32xf32, #tpu.memory_space<vmem>>, vector<16x32xf32>,
    return
  }
  func.func @transform_0(%arg0: i32, %arg1: i32) -> (i32, i32) {
    %c0_i32 = arith.constant 0 : i32
    return %arg0, %arg1 : i32, i32
  }
  func.func @transform_1(%arg0: i32, %arg1: i32) -> (i32, i32) {
    %c0_i32 = arith.constant 0 : i32
    %c0_i32_0 = arith.constant 0 : i32
    return %c0_i32, %arg1 : i32, i32
  }
  func.func @transform_2(%arg0: i32, %arg1: i32) -> (i32, i32) {
    %c0_i32 = arith.constant 0 : i32
    return %arg0, %arg1 : i32, i32
  }
}

</mosaic_0001>

<bundles_post_ra>
// kernel: tpu_custom_call.1
= control target key start
LH: loop header
LB: loop body
LE: loop exit
PB: predicated region body
PF: predicated region fallthrough
CT: control target
= control target key end

     0   :  { %7 = vsyncpa [#allocation3], 0  ;;  %s167_s0 = inlined_call_operand.hbm [shape: f32[16,32], index: 0, kind: input, shape index: {}]   ;;  %s168_s1 = inlined_call_operand.vmem [shape: f32[1,32], index: 1, kind: input, shape index: {}]   ;;  %s169_s2 = inlined_call_operand.hbm [shape: f32[16,32], index: 2, kind: output, shape index: {}]  }
   0x1   :  { %8 = vsyncpa [#allocation4], 0  ;;  %s133_s9 = smov [#allocation2]  }
   0x2   :  { %s14_s10 = sshll.u32 %s133_s9, 4  ;;  %s15_s10 = int_to_ptr.vmem [resolvable:$true] %s14_s10 }
   0x3   :  { %s97_s11 = scalar_lea.vmem %s15_s10, 256  ;;  %p102_p1 = scmp.lt.s32.totalorder %s15_s10, %s15_s10 }
   0x4   :  { %p98_p0 = scmp.ne.s32.totalorder %s15_s10, %s97_s11  ;;  %p103_p2 = scmp.lt.s32.totalorder %s97_s11, %s97_s11 }
   0x6   :  { %p104_p3 = por %p103_p2, %p102_p1 }
   0x8   :  { %p105_p4 = pnand %p104_p3, %p98_p0 }
   0xa   :  { %108 = shalt.err (!%p105_p4)
}
   0xb   :  { %s134_s12 = smov 128   ;;  %s135_s13 = smov 8  }
   0xc   :  { %20 = dma.hbm_to_vmem [thread:$0]  %s167_s0, 256, %s15_s10, [#allocation3], %s134_s12, %s134_s12, %s135_s13  }
   0xd   :  { %129 = dma.done.wait [#allocation3], 256  }
   0xe   :  { %130 = vsyncadd [#allocation3], 4294967040  ;;  %v26_v0 = vld [vmem:[#allocation2] sm:$0xff]  ;;  %v27_v1 = vld [vmem:[#allocation2 + $0x8] sm:$0xff]  ;;  %v46_v9 = vlaneseq  ;;  %s136_s0 = smov [#allocation5]   ;;  %vm53_vm0 = vcmask 261120  }
   0xf   :  { %v73_v2 = vmul.f32 -1.442695, %v26_v0  ;;  %v74_v3 = vmul.f32 -1.442695, %v27_v1  ;;  %v42_v4 = vld [vmem:[%s168_s1] sm:$0x1] }
  0x10   :  { %v47_v10 = vshrl.u32 %v46_v9, 7  ;;  %s61_s18 = sshll.u32 %s136_s0, 4  ;;  %s62_s18 = int_to_ptr.vmem [resolvable:$true] %s61_s18 }
  0x11   :  { %79 = vpow2.f32 %v73_v2  ;;  %s109_s1 = scalar_lea.vmem %s62_s18, 256  ;;  %p114_p6 = scmp.lt.s32.totalorder %s62_s18, %s62_s18 }
  0x12   :  { %81 = vpow2.f32 %v74_v3  ;;  %v48_v11 = vsub.s32 0, %v47_v10  ;;  %p110_p5 = scmp.ne.s32.totalorder %s62_s18, %s109_s1  ;;  %p115_p7 = scmp.lt.s32.totalorder %s109_s1, %s109_s1 }
  0x13   :  { %83 = vrcp.f32 %v42_v4 }
  0x14   :  { %p116_p8 = por %p115_p7, %p114_p6 }
  0x16   :  { %p117_p9 = pnand %p116_p8, %p110_p5 }
  0x1e   :  { %v80_v5 = vpop.eup %79 }
  0x1f   :  { %v82_v6 = vpop.eup %81  ;;  %v34_v7 = vadd.f32 1.0, %v80_v5 }
  0x20   :  { %v35_v8 = vadd.f32 1.0, %v82_v6  ;;  %v84_v12 = vpop.eup %83 }
  0x21   :  { %85 = vrcp.f32 %v34_v7  ;;  %v49_v13 = vrot.slane %v84_v12, %v48_v11 }
  0x22   :  { %87 = vrcp.f32 %v35_v8 }
  0x2e   :  { %v86_v14 = vpop.eup %85 }
  0x2f   :  { %v88_v15 = vpop.eup %87  ;;  %v40_v16 = vmul.f32 %v86_v14, %v26_v0 }
  0x30   :  { %v41_v17 = vmul.f32 %v88_v15, %v27_v1 }
  0x31   :  { %v51_v18 = vmul.f32 %v49_v13, %v40_v16 }
  0x32   :  { %v52_v19 = vmul.f32 %v49_v13, %v41_v17 }
  0x33   :  { %54 = vst.msk [vmem:[#allocation5] sm:$0xff] %vm53_vm0, %v51_v18 }
  0x34   :  { %55 = vst.msk [vmem:[#allocation5 + $0x8] sm:$0xff] %vm53_vm0, %v52_v19 }
  0x35   :  { %120 = shalt.err (!%p117_p9)
}
  0x36   :  { %67 = dma.vmem_to_hbm [thread:$0]  %s62_s18, 256, %s169_s2, [#allocation4], %s134_s12, %s134_s12, %s135_s13  }
  0x37   :  { %131 = dma.done.wait [#allocation4], 256  }
  0x38   :  { %132 = vsyncadd [#allocation4], 4294967040 }
  0x39   :  { %71 = vsyncpa [#allocation3], 1 }
  0x3a   :  { %72 = vsyncpa [#allocation4], 1 }

</bundles_post_ra>
